<compile_context>
chip_gen: v7x
topology: tpu7x:2x2x1
jax: 0.10.0
libtpu: 0.0.40
codegen_flags: <defaults>
</compile_context>

<pallas_src>
import functools

import jax
import jax.numpy as jnp
from jax.experimental import pallas as pl
from jax.experimental.pallas import tpu as pltpu


def _round_up(n: int, m: int) -> int:
    return ((n + m - 1) // m) * m


def _dim_upsampler_kernel(x_ref, w_ref, b_ref, gamma_ref, beta_ref, alpha_ref,
                          o_ref, *, eps: float):
    # x_ref:     (tile_rows, ch_in)   VMEM
    # w_ref:     (ch_in, ch_out)      VMEM (resident: constant block index)
    # b_ref:     (1, ch_out)          VMEM
    # gamma_ref: (1, ch_out)          VMEM
    # beta_ref:  (1, ch_out)          VMEM
    # alpha_ref: (1,)                 SMEM (PReLU, num_parameters=1 default)
    # o_ref:     (tile_rows, ch_out)  VMEM

    # Linear: y = x @ W + b   (W stored as (ch_in, ch_out) == PyTorch weight.T)
    x = x_ref[...].astype(jnp.float32)
    w = w_ref[...].astype(jnp.float32)
    y = jnp.dot(x, w, preferred_element_type=jnp.float32)
    y = y + b_ref[...].astype(jnp.float32)

    # LayerNorm over ch_out: fused single-pass statistics (E[y], E[y^2]).
    mean = jnp.mean(y, axis=-1, keepdims=True)
    mean_sq = jnp.mean(y * y, axis=-1, keepdims=True)
    var = jnp.maximum(mean_sq - mean * mean, 0.0)
    inv = jax.lax.rsqrt(var + eps)                          # (tile_rows, 1)

    g = gamma_ref[...].astype(jnp.float32)                  # (1, ch_out)
    be = beta_ref[...].astype(jnp.float32)                  # (1, ch_out)
    yn = (y - mean) * inv * g + be                          # single elementwise pass

    # Dropout: identity in eval mode.

    # PReLU with a single learnable alpha (nn.PReLU() default num_parameters=1).
    alpha = alpha_ref[0]
    o_ref[...] = jnp.where(yn >= 0.0, yn, alpha * yn).astype(o_ref.dtype)


def _pick_tile_rows(rows: int, ch_in: int, ch_out: int, act_itemsize: int,
                    row_align: int, vmem_budget_bytes: int) -> int:
    """Largest row tile (multiple of row_align, <=2048) fitting the VMEM budget,
    additionally capped so the grid has >= 2 steps when the problem allows it
    (keeps both v7x TensorCores busy)."""
    # Per-row bytes: x tile + out tile double-buffered (act dtype) + f32 intermediates.
    per_row = 2 * (ch_in + ch_out) * act_itemsize + 3 * ch_out * 4
    # Resident/fixed bytes: weight (counted double-buffered) + bias/gamma/beta.
    fixed = 2 * ch_in * ch_out * 4 + 2 * 3 * ch_out * 4
    avail = max(vmem_budget_bytes - fixed, row_align * per_row)
    cap = max(avail // per_row, row_align)

    two_steps = _round_up(pl.cdiv(rows, 2), row_align)      # ensures grid >= 2 when possible
    tile = min(2048, cap, _round_up(rows, row_align), two_steps)
    return max((int(tile) // row_align) * row_align, row_align)


def dim_upsampler(x, weight, bias, gamma, beta, alpha, *, eps: float = 1e-5,
                  tile_rows: int | None = None):
    """x: (batch, seq, ch_in) -> (batch, seq, ch_out).

    weight: (ch_in, ch_out)  == PyTorch Linear weight.T
    bias:   (ch_out,)        LayerNorm gamma/beta: (ch_out,)   alpha: scalar-like (PReLU)
    """
    batch, seq, ch_in = x.shape
    ch_out = weight.shape[1]
    rows = batch * seq
    act_itemsize = max(jnp.dtype(x.dtype).itemsize, 2)
    row_align = 16 if act_itemsize < 4 else 8               # packed-bf16 sublane pairs

    # 32 MiB sizing budget: safe on v7x (64 MiB physical) and trivially on v5e/v6e.
    vmem_budget = 32 * 1024 * 1024
    if tile_rows is None:
        tile_rows = _pick_tile_rows(rows, ch_in, ch_out, act_itemsize,
                                    row_align, vmem_budget)
    tile_rows = max((int(tile_rows) // row_align) * row_align, row_align)

    x2d = x.reshape(rows, ch_in)
    b2d = bias.reshape(1, ch_out)
    g2d = gamma.reshape(1, ch_out)
    be2d = beta.reshape(1, ch_out)
    a1d = jnp.asarray(alpha, dtype=jnp.float32).reshape(1)

    grid = (pl.cdiv(rows, tile_rows),)

    # Accurate scoped-VMEM limit: tiles + resident weight/params + f32 intermediates,
    # +25% headroom, no artificial floor, capped below v7x's 64 MiB.
    est = (2 * tile_rows * (ch_in + ch_out) * act_itemsize  # x + out tiles, double-buffered
           + 2 * ch_in * ch_out * 4                         # weight
           + 2 * 3 * ch_out * 4                             # bias / gamma / beta
           + 3 * tile_rows * ch_out * 4)                    # f32 intermediates (y, yn, select tmp)
    vmem_limit = int(min(48 * 1024 * 1024,
                         max(8 * 1024 * 1024, 1.25 * est)))

    out2d = pl.pallas_call(
        functools.partial(_dim_upsampler_kernel, eps=eps),
        out_shape=jax.ShapeDtypeStruct((rows, ch_out), x.dtype),
        grid_spec=pltpu.PrefetchScalarGridSpec(
            num_scalar_prefetch=0,
            grid=grid,
            in_specs=[
                pl.BlockSpec((tile_rows, ch_in), lambda i: (i, 0)),   # x tile
                pl.BlockSpec((ch_in, ch_out), lambda i: (0, 0)),      # weight (resident)
                pl.BlockSpec((1, ch_out), lambda i: (0, 0)),          # linear bias
                pl.BlockSpec((1, ch_out), lambda i: (0, 0)),          # ln gamma
                pl.BlockSpec((1, ch_out), lambda i: (0, 0)),          # ln beta
                pl.BlockSpec(memory_space=pltpu.MemorySpace.SMEM),    # prelu alpha
            ],
            out_specs=pl.BlockSpec((tile_rows, ch_out), lambda i: (i, 0)),
        ),
        compiler_params=pltpu.CompilerParams(
            dimension_semantics=("parallel",),   # shards the row grid across v7x's 2 TCs
            vmem_limit_bytes=vmem_limit,
        ),
    )(x2d, weight, b2d, g2d, be2d, a1d)

    return out2d.reshape(batch, seq, ch_out)


def _reference(x, weight, bias, gamma, beta, alpha, eps=1e-5):
    y = jnp.einsum("bsi,io->bso", x, weight) + bias
    mean = jnp.mean(y, axis=-1, keepdims=True)
    var = jnp.mean((y - mean) ** 2, axis=-1, keepdims=True)
    y = (y - mean) * jax.lax.rsqrt(var + eps)
    y = y * gamma + beta
    return jnp.where(y >= 0.0, y, alpha * y)


if __name__ == "__main__":
    key = jax.random.PRNGKey(0)
    kx, kw, kb, kg, kbeta, kx2 = jax.random.split(key, 6)

    # Config 1: small shapes consistent with the module (rows divide tile evenly).
    batch, seq, ch_in, ch_out = 2, 8, 4, 512
    x = jax.random.normal(kx, (batch, seq, ch_in), dtype=jnp.float32)
    weight = jax.random.normal(kw, (ch_in, ch_out), dtype=jnp.float32) * 0.1   # Linear weight.T
    bias = jax.random.normal(kb, (ch_out,), dtype=jnp.float32) * 0.01          # Linear bias
    gamma = 1.0 + 0.05 * jax.random.normal(kg, (ch_out,), dtype=jnp.float32)   # LayerNorm weight
    beta = 0.05 * jax.random.normal(kbeta, (ch_out,), dtype=jnp.float32)       # LayerNorm bias
    alpha = jnp.array([0.25], dtype=jnp.float32)                               # PReLU default init

    out = jax.block_until_ready(dim_upsampler(x, weight, bias, gamma, beta, alpha))
    ref = _reference(x, weight, bias, gamma, beta, alpha)
    assert out.shape == (batch, seq, ch_out)
    assert jnp.allclose(out, ref, atol=1e-4, rtol=1e-4), "mismatch vs reference (config 1)"

    # Config 2: rows NOT divisible by the tile -> exercises the ragged boundary
    # block (no wrapper pad / slice-back anymore).
    batch2, seq2 = 3, 10
    x2 = jax.random.normal(kx2, (batch2, seq2, ch_in), dtype=jnp.float32)
    out2 = jax.block_until_ready(dim_upsampler(x2, weight, bias, gamma, beta, alpha))
    ref2 = _reference(x2, weight, bias, gamma, beta, alpha)
    assert out2.shape == (batch2, seq2, ch_out)
    assert jnp.allclose(out2, ref2, atol=1e-4, rtol=1e-4), "mismatch vs reference (config 2)"

    print("KERNEL_OK")
</pallas_src>

<mosaic_0001>
module attributes {stable_mosaic.version = 11 : i64} {
  func.func @_dim_upsampler_kernel(%arg0: i32, %arg1: memref<8x4xf32, #tpu.memory_space<vmem>>, %arg2: memref<4x512xf32, #tpu.memory_space<vmem>>, %arg3: memref<1x512xf32, #tpu.memory_space<vmem>>, %arg4: memref<1x512xf32, #tpu.memory_space<vmem>>, %arg5: memref<1x512xf32, #tpu.memory_space<vmem>>, %arg6: memref<1xf32, #tpu.memory_space<smem>>, %arg7: memref<8x512xf32, #tpu.memory_space<vmem>>) attributes {dimension_semantics = [#tpu.dimension_semantics<parallel>], iteration_bounds = array<i64: 2>, scalar_prefetch = 0 : i64, scratch_operands = 0 : i64, tpu.core_type = #tpu.core_type<tc>, window_params = [{transform_indices = @transform_0, window_bounds = array<i64: 8, 4>}, {pipeline_mode = #tpu.pipeline_mode<synchronous>, transform_indices = @transform_1, window_bounds = array<i64: 4, 512>}, {pipeline_mode = #tpu.pipeline_mode<synchronous>, transform_indices = @transform_2, window_bounds = array<i64: 1, 512>}, {pipeline_mode = #tpu.pipeline_mode<synchronous>, transform_indices = @transform_3, window_bounds = array<i64: 1, 512>}, {pipeline_mode = #tpu.pipeline_mode<synchronous>, transform_indices = @transform_4, window_bounds = array<i64: 1, 512>}, {transform_indices = @transform_5, window_bounds = array<i64: 1>}, {transform_indices = @transform_6, window_bounds = array<i64: 8, 512>}]} {
    %c0 = arith.constant 0 : index
    %c0_0 = arith.constant 0 : index
    %0 = vector.load %arg1[%c0, %c0_0] : memref<8x4xf32, #tpu.memory_space<vmem>>, vector<8x4xf32>
    %c0_1 = arith.constant 0 : index
    %c0_2 = arith.constant 0 : index
    %1 = vector.load %arg2[%c0_1, %c0_2] : memref<4x512xf32, #tpu.memory_space<vmem>>, vector<4x512xf32>
    %cst = arith.constant dense<0.000000e+00> : vector<8x512xf32>
    %2 = tpu.matmul %0, %1, %cst {dimension_numbers = #tpu.dot_dimension_numbers<[1], [0], [0], [1], [0, 0, 1, 1], [], []>} : vector<8x4xf32>, vector<4x512xf32>, vector<8x512xf32> -> vector<8x512xf32>
    %c0_3 = arith.constant 0 : index
    %c0_4 = arith.constant 0 : index
    %3 = vector.load %arg3[%c0_3, %c0_4] : memref<1x512xf32, #tpu.memory_space<vmem>>, vector<1x512xf32>
    %4 = vector.broadcast %3 : vector<1x512xf32> to vector<8x512xf32>
    %5 = arith.addf %2, %4 : vector<8x512xf32>
    %cst_5 = arith.constant dense<0.000000e+00> : vector<8xf32>
    %6 = vector.multi_reduction <add>, %5, %cst_5 [1] : vector<8x512xf32> to vector<8xf32>
    %7 = vector.shape_cast %6 : vector<8xf32> to vector<8x1xf32>
    %cst_6 = arith.constant 5.120000e+02 : f32
    %8 = vector.broadcast %cst_6 : f32 to vector<8x1xf32>
    %9 = arith.divf %7, %8 : vector<8x1xf32>
    %10 = arith.mulf %5, %5 : vector<8x512xf32>
    %cst_7 = arith.constant dense<0.000000e+00> : vector<8xf32>
    %11 = vector.multi_reduction <add>, %10, %cst_7 [1] : vector<8x512xf32> to vector<8xf32>
    %12 = vector.shape_cast %11 : vector<8xf32> to vector<8x1xf32>
    %cst_8 = arith.constant 5.120000e+02 : f32
    %13 = vector.broadcast %cst_8 : f32 to vector<8x1xf32>
    %14 = arith.divf %12, %13 : vector<8x1xf32>
    %15 = arith.mulf %9, %9 : vector<8x1xf32>
    %16 = arith.subf %14, %15 : vector<8x1xf32>
    %cst_9 = arith.constant 0.000000e+00 : f32
    %17 = vector.broadcast %cst_9 : f32 to vector<8x1xf32>
    %18 = arith.maximumf %16, %17 : vector<8x1xf32>
    %cst_10 = arith.constant 9.99999974E-6 : f32
    %19 = vector.broadcast %cst_10 : f32 to vector<8x1xf32>
    %20 = arith.addf %18, %19 : vector<8x1xf32>
    %21 = math.rsqrt %20 : vector<8x1xf32>
    %c0_11 = arith.constant 0 : index
    %c0_12 = arith.constant 0 : index
    %22 = vector.load %arg4[%c0_11, %c0_12] : memref<1x512xf32, #tpu.memory_space<vmem>>, vector<1x512xf32>
    %c0_13 = arith.constant 0 : index
    %c0_14 = arith.constant 0 : index
    %23 = vector.load %arg5[%c0_13, %c0_14] : memref<1x512xf32, #tpu.memory_space<vmem>>, vector<1x512xf32>
    %24 = vector.broadcast %9 : vector<8x1xf32> to vector<8x512xf32>
    %25 = arith.subf %5, %24 : vector<8x512xf32>
    %26 = vector.broadcast %21 : vector<8x1xf32> to vector<8x512xf32>
    %27 = arith.mulf %25, %26 : vector<8x512xf32>
    %28 = vector.broadcast %22 : vector<1x512xf32> to vector<8x512xf32>
    %29 = arith.mulf %27, %28 : vector<8x512xf32>
    %30 = vector.broadcast %23 : vector<1x512xf32> to vector<8x512xf32>
    %31 = arith.addf %29, %30 : vector<8x512xf32>
    %c0_15 = arith.constant 0 : index
    %32 = memref.load %arg6[%c0_15] : memref<1xf32, #tpu.memory_space<smem>>
    %cst_16 = arith.constant 0.000000e+00 : f32
    %33 = vector.broadcast %cst_16 : f32 to vector<8x512xf32>
    %34 = arith.cmpf oge, %31, %33 : vector<8x512xf32>
    %35 = vector.broadcast %32 : f32 to vector<8x512xf32>
    %36 = arith.mulf %35, %31 : vector<8x512xf32>
    %37 = arith.select %34, %31, %36 : vector<8x512xi1>, vector<8x512xf32>
    %c0_17 = arith.constant 0 : index
    %c0_18 = arith.constant 0 : index
    %38 = vector.load %arg7[%c0_17, %c0_18] : memref<8x512xf32, #tpu.memory_space<vmem>>, vector<8x512xf32>
    tpu.vector_store %arg7[%c0_17, %c0_18], %37 {strides = array<i32>} : memref<8x512xf32, #tpu.memory_space<vmem>>, vector<8x512xf32>,
    return
  }
  func.func @transform_0(%arg0: i32) -> (i32, i32) {
    %c0_i32 = arith.constant 0 : i32
    %c0_i32_0 = arith.constant 0 : i32
    return %arg0, %c0_i32 : i32, i32
  }
  func.func @transform_1(%arg0: i32) -> (i32, i32) {
    %c0_i32 = arith.constant 0 : i32
    %c0_i32_0 = arith.constant 0 : i32
    %c0_i32_1 = arith.constant 0 : i32
    return %c0_i32, %c0_i32_0 : i32, i32
  }
  func.func @transform_2(%arg0: i32) -> (i32, i32) {
    %c0_i32 = arith.constant 0 : i32
    %c0_i32_0 = arith.constant 0 : i32
    %c0_i32_1 = arith.constant 0 : i32
    return %c0_i32, %c0_i32_0 : i32, i32
  }
  func.func @transform_3(%arg0: i32) -> (i32, i32) {
    %c0_i32 = arith.constant 0 : i32
    %c0_i32_0 = arith.constant 0 : i32
    %c0_i32_1 = arith.constant 0 : i32
    return %c0_i32, %c0_i32_0 : i32, i32
  }
  func.func @transform_4(%arg0: i32) -> (i32, i32) {
    %c0_i32 = arith.constant 0 : i32
    %c0_i32_0 = arith.constant 0 : i32
    %c0_i32_1 = arith.constant 0 : i32
    return %c0_i32, %c0_i32_0 : i32, i32
  }
  func.func @transform_5(%arg0: i32) -> i32 {
    %c0_i32 = arith.constant 0 : i32
    %c0_i32_0 = arith.constant 0 : i32
    return %c0_i32 : i32
  }
  func.func @transform_6(%arg0: i32) -> (i32, i32) {
    %c0_i32 = arith.constant 0 : i32
    %c0_i32_0 = arith.constant 0 : i32
    return %arg0, %c0_i32 : i32, i32
  }
}

</mosaic_0001>

<bundles_post_ra>
// kernel: tpu_custom_call.1
= control target key start
LH: loop header
LB: loop body
LE: loop exit
PB: predicated region body
PF: predicated region fallthrough
CT: control target
= control target key end

     0   :  { %s906_s0 = inlined_call_operand.vmem [shape: f32[16,4], index: 0, kind: input, shape index: {}]   ;;  %s907_s1 = inlined_call_operand.vmem [shape: f32[4,512], index: 1, kind: input, shape index: {}]   ;;  %s908_s2 = inlined_call_operand.vmem [shape: f32[1,512], index: 2, kind: input, shape index: {}]   ;;  %s909_s3 = inlined_call_operand.vmem [shape: f32[1,512], index: 3, kind: input, shape index: {}]   ;;  %s910_s4 = inlined_call_operand.vmem [shape: f32[1,512], index: 4, kind: input, shape index: {}]   ;;  %s911_s5 = inlined_call_operand.<no memory space> [shape: f32[1], index: 5, kind: input, shape index: {}]   ;;  %s912_s6 = inlined_call_operand.hbm [shape: f32[16,512], index: 6, kind: output, shape index: {}]  }
   0x1   :  { %11 = sst [smem:[#allocation2]] %s911_s5 }
   0x2   :  { %12 = vsyncpa [#allocation4], 0 }
   0x3   :  { %14 = vsyncpa [#allocation4 + $0x1], 0  ;;  %s772_s23 = smov 0   ;;  %s774_s24 = smov 0  }
   0x4   :  { %s776_s25 = smov 0   ;;  %s778_s26 = smov 0  }
   0x5 LB: > { %s793_s5 = sadd.s32 4294967295, %s730_s26   ;;  %s606_s27 = sadd.s32 4294967294, %s730_s26   ;;  %s730_s26 = sphi %s778_s26, %s918_s26   ;;  %s726_s25 = sphi %s776_s25, %s917_s25   ;;  %s722_s24 = sphi %s774_s24, %s916_s24   ;;  %s718_s23 = sphi %s772_s23, %s915_s23  }
   0x6   : > { %s797_s28 = sadd.s32 1, %s730_s26   ;;  %s158_s29 = sadd.s32 1, %s726_s25 }
   0x7   : > { %s155_s30 = ssub.s32 %s730_s26, %s797_s28  ;;  %p168_p0 = scmp.ne.s32.totalorder %s726_s25, %s722_s24 }
   0x8   : > { %p156_p1 = scmp.eq.s32.totalorder %s155_s30, 0  ;;  %p169_p2 = scmp.eq.s32.totalorder %s793_s5, 1 }
   0x9   : > { %p174_p3 = scmp.ne.s32.totalorder %s722_s24, %s718_s23  ;;  %p175_p4 = scmp.eq.s32.totalorder %s606_s27, 1 }
   0xa   : > { %s808_s7 = scalar_select %p156_p1, %s726_s25, %s158_s29  }
   0xb   : > { %p810_p5 = por %p169_p2, %p168_p0  ;;  %p814_p6 = por %p175_p4, %p174_p3 }
   0xc   : > { %p609_p7 = scmp.ge.s32.totalorder %s730_s26, 1  ;;  %p215_p8 = scmp.lt.s32.totalorder %s730_s26, 3 }
   0xe   : > { %p216_p9 = pnand %p609_p7, %p215_p8 }
   0xf   : > { %v249_v0 = vld [vmem:[%s907_s1] sm:$0xff] (!%p216_p9)  ;;  %vm281_vm0 = vcmask (!%p216_p9), 1043456   ;;  %p244_p10 = scmp.lt.s32.totalorder (!%p216_p9), %s793_s5, 1  ;;  %v250_v1 = vld [vmem:[%s907_s1 + $0x8] sm:$0xff] (!%p216_p9)  ;;  %v732_v3 = vmov (!%p216_p9), 0.0   ;;  %vm277_vm1 = vcmask (!%p216_p9), 31744   ;;  %v253_v6 = vlaneseq (!%p216_p9) }
  0x10   : > { %219 = sbr.rel (%p216_p9) target bundleno = 439 (0x1b7), region = 44  ;;  %v275_v2 = vcombine.high (!%p216_p9), %v249_v0, %v249_v0  ;;  %354 = vmatprep.mubr.f32.mxu0 (!%p216_p9), %v732_v3  ;;  %v276_v4 = vcombine.high (!%p216_p9), %v250_v1, %v250_v1  ;;  %425 = vmatprep.mubr.f32.mxu1 (!%p216_p9), %v732_v3  ;;  %v251_v10 = vld [vmem:[%s908_s2] sm:$0xf] (!%p216_p9)  ;;  %s514_s27 = sld [smem:[#allocation2]] (!%p216_p9) }
  0x11   : > { %v254_v7 = vshrl.u32 (!%p216_p9), %v253_v6, 7  ;;  %v454_v43 = vld [vmem:[%s909_s3] sm:$0xf] (!%p216_p9)  ;;  %s241_s10 = sand.u32 (!%p216_p9), 1, %s722_s24   ;;  %s623_s12 = sshll.u32 (!%p216_p9), %s793_s5, 9 }
  0x12   : > { %612 = vmatprep.subr.msk.mxu0 (!%p216_p9), %vm281_vm0, %v275_v2  ;;  %615 = vmatprep.subr.msk.mxu1 (!%p216_p9), %vm281_vm0, %v276_v4  ;;  %v455_v44 = vld [vmem:[%s910_s4] sm:$0xf] (!%p216_p9)  ;;  %s610_s11 = sshll.u32 (!%p216_p9), %s241_s10, 5  ;;  %s862_s17 = scalar_lea.hbm (!%p216_p9), %s912_s6, %s623_s12 }
  0x13   : > { %613 = vmatpush1.msk.msra.mxu0 (!%p216_p9), %vm281_vm0, %v249_v0  ;;  %616 = vmatpush1.msk.msra.mxu1 (!%p216_p9), %vm281_vm0, %v250_v1  ;;  %v831_v8 = vsub.s32 (!%p216_p9), 0, %v254_v7  ;;  %v833_v9 = vsub.s32 (!%p216_p9), 2, %v254_v7  ;;  %v838_v11 = vsub.s32 (!%p216_p9), 1, %v254_v7  ;;  %v267_v15 = vsub.s32 (!%p216_p9), 3, %v254_v7  ;;  %s243_s13 = scalar_lea.vmem (!%p216_p9), [#allocation3], %s610_s11  ;;  %s733_s19 = smov (!%p216_p9), [#allocation3]  }
  0x14   : > { %s672_s20 = sshll.u32 (!%p216_p9), %s733_s19, 4  ;;  %s673_s20 = int_to_ptr.vmem [resolvable:$false] %s672_s20 }
  0x15   : > { %v256_v12 = vrot.slane (!%p216_p9), %v251_v10, %v831_v8  ;;  %v264_v13 = vrot.slane (!%p216_p9), %v251_v10, %v833_v9  ;;  %v260_v14 = vrot.slane (!%p216_p9), %v251_v10, %v838_v11  ;;  %v268_v23 = vrot.slane (!%p216_p9), %v251_v10, %v267_v15  ;;  %s674_s21 = scalar_lea.vmem (!%p216_p9), %s673_s20, 1024 }
  0x16   : > { %v468_v45 = vrot.slane (!%p216_p9), %v454_v43, %v831_v8  ;;  %v472_v46 = vrot.slane (!%p216_p9), %v454_v43, %v838_v11  ;;  %v476_v47 = vrot.slane (!%p216_p9), %v454_v43, %v833_v9  ;;  %v480_v48 = vrot.slane (!%p216_p9), %v454_v43, %v267_v15 }
  0x17   : > { %s245_s14 = scalar_select %p244_p10, %s793_s5, 1  ;;  %v493_v54 = vrot.slane %v455_v44, %v831_v8  ;;  %v497_v55 = vrot.slane %v455_v44, %v838_v11  ;;  %v501_v56 = vrot.slane %v455_v44, %v833_v9  ;;  %v505_v57 = vrot.slane %v455_v44, %v267_v15 }
  0x18   : > { %v519_v2 = vstv %s514_s27  ;;  %s533_s5 = scalar_lea.sflag [#allocation4], %s241_s10 }
  0x19   : > { %s611_s15 = sshll.u32 %s245_s14, 3  ;;  %s547_s14 = sshll.u32 %s243_s13, 4  ;;  %s864_s14 = int_to_ptr.vmem [resolvable:$true] %s547_s14 }
  0x1a   : > { %s247_s18 = scalar_lea.vmem %s906_s0, %s611_s15  ;;  %p675_p0 = scmp.lt.s32.totalorder %s864_s14, %s673_s20 }
  0x1b   : > { %v248_v5 = vld [vmem:[%s247_s18] sm:$0xff]  ;;  %s668_s18 = scalar_lea.vmem %s864_s14, 512 }
  0x1c   : > { %614 = vmatmul.mubr.msk.f32.vlgmr.msra.gmra.mrb[0].mxu0 %vm277_vm1, %v248_v5  ;;  %617 = vmatmul.mubr.msk.f32.vlgmr.msra.gmra.mrb[0].mxu1 %vm277_vm1, %v248_v5  ;;  %p669_p11 = scmp.ne.s32.totalorder %s864_s14, %s668_s18  ;;  %p676_p1 = scmp.lt.s32.totalorder %s674_s21, %s668_s18 }
  0x1e   : > { %p670_p12 = pnand %p669_p11, %p810_p5  ;;  %p677_p2 = por %p676_p1, %p675_p0 }
  0x20   : > { %p671_p13 = pneg %p670_p12 }
  0x22   : > { %p678_p3 = pnand %p677_p2, %p671_p13 }
  0xef   : > { %v356_v16 = vpop.f32.mrb[0].mxu0  ;;  %v427_v17 = vpop.f32.mrb[0].mxu1 }
  0xf0   : > { %v357_v18 = vadd.f32 %v356_v16, %v256_v12  ;;  %v358_v19 = vpop.f32.mrb[1].mxu0  ;;  %v428_v20 = vadd.f32 %v427_v17, %v264_v13  ;;  %v429_v21 = vpop.f32.mrb[1].mxu1 }
  0xf1   : > { %v359_v22 = vadd.f32 %v358_v19, %v260_v14  ;;  %v430_v28 = vadd.f32 %v429_v21, %v268_v23 }
  0xf2   : > { %v439_v24 = vmul.f32 %v357_v18, %v357_v18  ;;  %v441_v26 = vmul.f32 %v428_v20, %v428_v20 }
  0xf3   : > { %v440_v25 = vmul.f32 %v359_v22, %v359_v22  ;;  %v432_v27 = vadd.f32 %v359_v22, %v357_v18  ;;  %v442_v33 = vmul.f32 %v430_v28, %v430_v28 }
  0xf5   : > { %v433_v29 = vadd.f32 %v432_v27, %v428_v20  ;;  %v443_v30 = vadd.f32 %v440_v25, %v439_v24 }
  0xf7   : > { %v434_v31 = vadd.f32 %v433_v29, %v430_v28  ;;  %v444_v32 = vadd.f32 %v443_v30, %v441_v26 }
  0xf9   : > { %435 = vadd.xlane.f32.xlu0 %v434_v31  ;;  %v445_v34 = vadd.f32 %v444_v32, %v442_v33 }
  0xfd   : > { %446 = vadd.xlane.f32.xlu0 %v445_v34 }
 0x186   : > { %v436_v35 = vpop.xlane.xlu0 %435 }
 0x187   : > { %v438_v36 = vmul.f32 0.001953125, %v436_v35 }
 0x189   : > { %v449_v38 = vmul.f32 %v438_v36, %v438_v36  ;;  %v456_v49 = vsub.f32 %v357_v18, %v438_v36  ;;  %v457_v50 = vsub.f32 %v359_v22, %v438_v36  ;;  %v458_v51 = vsub.f32 %v428_v20, %v438_v36 }
 0x18a   : > { %v447_v37 = vpop.xlane.xlu0 %446  ;;  %v459_v52 = vsub.f32 %v430_v28, %v438_v36 }
 0x18b   : > { %v448_v39 = vmul.f32 0.001953125, %v447_v37 }
 0x18d   : > { %v450_v40 = vsub.f32 %v448_v39, %v449_v38 }
 0x18f   : > { %v451_v41 = vmax.f32 %v450_v40, 0.0 }
 0x191   : > { %v452_v42 = vadd.f32 1e-05, %v451_v41 }
 0x193   : > { %666 = vrsqrt.f32 %v452_v42 }
 0x19d   : > { %v667_v53 = vpop.eup %666 }
 0x19e   : > { %v460_v58 = vmul.f32 %v667_v53, %v456_v49  ;;  %v461_v59 = vmul.f32 %v667_v53, %v457_v50  ;;  %v462_v60 = vmul.f32 %v667_v53, %v458_v51  ;;  %v463_v61 = vmul.f32 %v667_v53, %v459_v52 }
 0x1a0   : > { %v485_v62 = vmul.f32 %v468_v45, %v460_v58  ;;  %v486_v63 = vmul.f32 %v472_v46, %v461_v59  ;;  %v487_v0 = vmul.f32 %v476_v47, %v462_v60  ;;  %v488_v1 = vmul.f32 %v480_v48, %v463_v61 }
 0x1a2   : > { %v510_v3 = vadd.f32 %v493_v54, %v485_v62  ;;  %v511_v4 = vadd.f32 %v497_v55, %v486_v63  ;;  %v512_v5 = vadd.f32 %v501_v56, %v487_v0  ;;  %v513_v6 = vadd.f32 %v505_v57, %v488_v1 }
 0x1a4   : > { %vm515_vm2 = vcmp.ge.f32.partialorder %v510_v3, 0.0  ;;  %vm516_vm3 = vcmp.ge.f32.partialorder %v511_v4, 0.0  ;;  %vm517_vm4 = vcmp.ge.f32.partialorder %v512_v5, 0.0  ;;  %vm518_vm5 = vcmp.ge.f32.partialorder %v513_v6, 0.0 }
 0x1a5   : > { %v520_v7 = vmul.f32 %v519_v2, %v510_v3  ;;  %v521_v8 = vmul.f32 %v519_v2, %v511_v4  ;;  %v522_v9 = vmul.f32 %v519_v2, %v512_v5  ;;  %v523_v10 = vmul.f32 %v519_v2, %v513_v6 }
 0x1a7   : > { %v524_v11 = vsel %vm515_vm2, %v510_v3, %v520_v7  ;;  %v525_v12 = vsel %vm516_vm3, %v511_v4, %v521_v8  ;;  %v526_v13 = vsel %vm517_vm4, %v512_v5, %v522_v9  ;;  %v527_v14 = vsel %vm518_vm5, %v513_v6, %v523_v10 }
 0x1a8   : > { %528 = vst [vmem:[%s243_s13] sm:$0xff] %v524_v11  ;;  %529 = vst [vmem:[%s243_s13 + $0x8] sm:$0xff] %v525_v12 }
 0x1a9   : > { %530 = vst [vmem:[%s243_s13 + $0x10] sm:$0xff] %v526_v13  ;;  %531 = vst [vmem:[%s243_s13 + $0x18] sm:$0xff] %v527_v14 }
 0x1aa   : > { %681 = shalt.err (!%p678_p3)
}
 0x1ab   : > { %s682_s22 = scalar_lea.hbm %s862_s17, 512  ;;  %s686_s30 = scalar_lea.hbm %s912_s6, 1024 }
 0x1ac   : > { %p683_p4 = scmp.ne.s32.totalorder %s862_s17, %s682_s22  ;;  %p687_p9 = scmp.lt.u32.totalorder %s862_s17, %s912_s6 }
 0x1ad   : > { %p688_p10 = scmp.lt.u32.totalorder %s686_s30, %s682_s22  ;;  %p690_p12 = scmp.lt.u32.totalorder %s682_s22, %s862_s17 }
 0x1ae   : > { %p684_p7 = pnand %p683_p4, %p810_p5 }
 0x1af   : > { %p689_p11 = por %p688_p10, %p687_p9 }
 0x1b0   : > { %p685_p8 = pneg %p684_p7 }
 0x1b1   : > { %p691_p13 = por %p690_p12, %p689_p11 }
 0x1b3   : > { %p692_p0 = pnand %p691_p13, %p685_p8 }
 0x1b5   : > { %695 = shalt.err (!%p692_p0)
}
 0x1b6   : > { %624 = dma.vmem_to_hbm [thread:$0]  (%p810_p5), %s864_s14, 512, %s862_s17, %s533_s5  }
 0x1b7 PF: > { %p630_p1 = scmp.ge.s32.totalorder %s730_s26, 2  ;;  %s559_s12 = sand.u32 1, %s718_s23  }
 0x1b8   : > { %s560_s13 = scalar_lea.sflag [#allocation4], %s559_s12 }
 0x1b9   : > { %p627_p2 = pnand %p630_p1, %p814_p6 }
 0x1bb   : > { %713 = dma.done.wait (!%p627_p2), %s560_s13, 512  }
 0x1bc   : > { %715 = vsyncadd (!%p627_p2), %s560_s13, 4294966784  ;;  %p17_p3 = scmp.ge.s32.totalorder %s797_s28, 4   ;;  %s915_s23 = smov %s722_s24 }
 0x1bd   : > { %s916_s24 = smov %s726_s25  ;;  %s917_s25 = smov %s808_s7 }
 0x1be   : > { %s918_s26 = smov %s797_s28  ;;  %19 = sbr.rel (!%p17_p3) target bundleno = 5 (0x5), region = 79 }
 0x1c5   :  { %565 = vsyncpa [#allocation4], 1 }
 0x1c6   :  { %567 = vsyncpa [#allocation4 + $0x1], 1 }

</bundles_post_ra>
